<compile_context>
chip_gen: v7x
topology: tpu7x:2x2x1
jax: 0.10.0
libtpu: 0.0.40
codegen_flags: <defaults>
</compile_context>

<pallas_src>
import jax
import jax.numpy as jnp
from jax import lax
from jax.experimental import pallas as pl
from jax.experimental.pallas import tpu as pltpu

_LANES = 128        # slab lane width (vreg minor dim)
_GROUP = 256        # rows per inner accumulation group (multiple of 32)


def _cdiv(a, b):
    return -(-a // b)


def _make_partials_call(margin, dtypes, tile_rows, n_tiles, num_parallel,
                        total_blocks, R, n_true_elems):
    """Build the pallas_call producing (num_parallel*8, 128) partial sums."""
    margin = float(margin)
    n_groups = tile_rows // _GROUP
    last_block = total_blocks - 1

    def kernel(out_ref, lab_ref, partial_ref):
        p = pl.program_id(0)
        t = pl.program_id(1)

        @pl.when(t == 0)
        def _init():
            partial_ref[...] = jnp.zeros_like(partial_ref)

        # Unclamped global start row of this grid step; overflow tiles created
        # by the parallel-axis round-up have row0 >= R and are fully masked.
        row0 = (p * n_tiles + t) * tile_rows

        def tile_sum(masked):
            def body(g, acc):
                off = pl.multiple_of(g * _GROUP, _GROUP)
                o = out_ref[pl.ds(off, _GROUP), :].astype(jnp.float32)
                l = lab_ref[pl.ds(off, _GROUP), :].astype(jnp.float32)
                h = jnp.maximum(margin - o, 0.0)
                # General formula (exact for non-binary labels as well).
                per = (1.0 - l) * (o * o) + l * (h * h)
                if masked:
                    rid = row0 + off + lax.broadcasted_iota(
                        jnp.int32, (_GROUP, _LANES), 0)
                    per = jnp.where(rid < R, per, 0.0)
                # Sublane fold: (GROUP,128) -> (GROUP//8, 8, 128) -> (8, 128)
                return acc + per.reshape(_GROUP // 8, 8, _LANES).sum(axis=0)
            return lax.fori_loop(0, n_groups, body,
                                 jnp.zeros((8, _LANES), jnp.float32))

        fully_in = row0 + tile_rows <= R

        @pl.when(fully_in)
        def _fast():                       # hot path: no mask arithmetic
            partial_ref[...] += tile_sum(False)

        @pl.when(jnp.logical_not(fully_in))
        def _edge():                       # boundary / overflow tiles
            partial_ref[...] += tile_sum(True)

    def in_map(p, t):
        # Clamp so the DMA of an overflow tile re-reads the last real block;
        # its contribution is fully masked out in the kernel body.
        return (jnp.minimum(p * n_tiles + t, last_block), 0)

    out_dt, lab_dt = dtypes
    bytes_accessed = (int(n_true_elems)
                      * (jnp.dtype(out_dt).itemsize + jnp.dtype(lab_dt).itemsize)
                      + num_parallel * 8 * _LANES * 4)

    return pl.pallas_call(
        kernel,
        out_shape=jax.ShapeDtypeStruct((num_parallel * 8, _LANES), jnp.float32),
        grid_spec=pltpu.PrefetchScalarGridSpec(
            num_scalar_prefetch=0,
            grid=(num_parallel, n_tiles),
            in_specs=[
                pl.BlockSpec((tile_rows, _LANES), in_map),
                pl.BlockSpec((tile_rows, _LANES), in_map),
            ],
            out_specs=pl.BlockSpec((8, _LANES), lambda p, t: (p, 0)),
        ),
        compiler_params=pltpu.CompilerParams(
            dimension_semantics=("parallel", "arbitrary"),
            vmem_limit_bytes=32 * 1024 * 1024,
        ),
        cost_estimate=pl.CostEstimate(
            flops=8 * int(n_true_elems),
            transcendentals=0,
            bytes_accessed=int(bytes_accessed),
        ),
    )


def contrastive_loss(output, label, margin=2.0, num_parallel=2,
                     target_block_bytes=4 << 20):
    """Scalar float32 loss identical to the PyTorch ContrastiveLoss.forward."""
    assert output.shape == label.shape
    n_true = int(output.size)
    out_flat = output.reshape(-1)          # free: contiguous row-major
    lab_flat = label.reshape(-1)

    # Tiny inputs: a Pallas launch is pure overhead; plain JAX is exact.
    if n_true < _GROUP * _LANES:
        o = out_flat.astype(jnp.float32)
        l = lab_flat.astype(jnp.float32)
        h = jnp.maximum(float(margin) - o, 0.0)
        return jnp.mean((1.0 - l) * (o * o) + l * (h * h))

    # Rare fallback: lane-ragged element count needs one flat pad copy so the
    # (R, 128) view exists.  Padded (output=0, label=0) elements contribute 0.
    # TODO(synk): a 1-D pipelined kernel with a flat-index mask would remove
    # this last pad copy for numel % 128 != 0.
    if n_true % _LANES != 0:
        pad = _LANES - n_true % _LANES
        out_flat = jnp.pad(out_flat, (0, pad))
        lab_flat = jnp.pad(lab_flat, (0, pad))

    R = out_flat.size // _LANES
    out2 = out_flat.reshape(R, _LANES)     # free metadata reshape
    lab2 = lab_flat.reshape(R, _LANES)

    # Row-tile sizing: ~target_block_bytes of combined input per block, in
    # multiples of _GROUP, never exceeding the true row count (so blocks are
    # at most partial at the array edge, never larger than the array).
    row_bytes = _LANES * (out2.dtype.itemsize + lab2.dtype.itemsize)
    tr = max(_GROUP, (int(target_block_bytes) // row_bytes) // _GROUP * _GROUP)
    tile_rows = min(tr, (R // _GROUP) * _GROUP)

    total_blocks = _cdiv(R, tile_rows)
    num_parallel = max(1, min(int(num_parallel), total_blocks))
    n_tiles = _cdiv(total_blocks, num_parallel)

    call = _make_partials_call(margin, (out2.dtype, lab2.dtype), tile_rows,
                               n_tiles, num_parallel, total_blocks, R, n_true)
    partials = call(out2, lab2)            # (num_parallel*8, 128) float32
    return jnp.sum(partials) / n_true      # tiny final reduce in plain JAX


def _reference(output, label, margin=2.0):
    o = output.astype(jnp.float32)
    l = label.astype(jnp.float32)
    return jnp.mean((1.0 - l) * o ** 2
                    + l * jnp.clip(margin - o, 0.0, None) ** 2)


if __name__ == "__main__":
    key = jax.random.PRNGKey(0)
    k1, k2, k3, k4, k5, k6 = jax.random.split(key, 6)

    # Case 1: f32 distances, soft (non-binary) float labels; single clean tile.
    B1, D1 = 512, 128
    out1 = jax.random.uniform(k1, (B1, D1), dtype=jnp.float32) * 3.0
    lab1 = jax.random.uniform(k2, (B1, D1), dtype=jnp.float32)
    loss1 = jax.block_until_ready(contrastive_loss(out1, lab1, margin=2.0))
    ref1 = _reference(out1, lab1, margin=2.0)
    assert jnp.allclose(loss1, ref1, rtol=1e-4, atol=1e-6), (loss1, ref1)

    # Case 2: bf16 distances, binary f32 labels, ragged row count (R=1250).
    # Small blocks force a (2, 2) grid: both parallel slices, a partial edge
    # block, a fully masked overflow tile, and multi-tile accumulation.
    B2, D2 = 1000, 160
    out2 = (jax.random.uniform(k3, (B2, D2), dtype=jnp.float32) * 3.0
            ).astype(jnp.bfloat16)
    lab2 = (jax.random.uniform(k4, (B2, D2)) > 0.5).astype(jnp.float32)
    loss2 = jax.block_until_ready(
        contrastive_loss(out2, lab2, margin=2.0, target_block_bytes=512 * 1024))
    ref2 = _reference(out2, lab2, margin=2.0)
    assert jnp.allclose(loss2, ref2, rtol=1e-4, atol=1e-6), (loss2, ref2)

    # Case 3: bf16 distances with int8 binary labels (narrow-dtype streaming),
    # clean single-tile path.
    B3, D3 = 768, 128
    out3 = (jax.random.uniform(k5, (B3, D3), dtype=jnp.float32) * 3.0
            ).astype(jnp.bfloat16)
    lab3 = (jax.random.uniform(k6, (B3, D3)) > 0.5).astype(jnp.int8)
    loss3 = jax.block_until_ready(contrastive_loss(out3, lab3, margin=2.0))
    ref3 = _reference(out3, lab3, margin=2.0)
    assert jnp.allclose(loss3, ref3, rtol=1e-4, atol=1e-6), (loss3, ref3)

    print("KERNEL_OK")
</pallas_src>

<mosaic_0001>
module attributes {stable_mosaic.version = 11 : i64} {
  func.func @kernel(%arg0: i32, %arg1: i32, %arg2: memref<512x128xf32, #tpu.memory_space<vmem>>, %arg3: memref<512x128xf32, #tpu.memory_space<vmem>>, %arg4: memref<8x128xf32, #tpu.memory_space<vmem>>) attributes {dimension_semantics = [#tpu.dimension_semantics<parallel>, #tpu.dimension_semantics<arbitrary>], iteration_bounds = array<i64: 1, 1>, scalar_prefetch = 0 : i64, scratch_operands = 0 : i64, tpu.core_type = #tpu.core_type<tc>, window_params = [{transform_indices = @transform_0, window_bounds = array<i64: 512, 128>}, {transform_indices = @transform_1, window_bounds = array<i64: 512, 128>}, {transform_indices = @transform_2, window_bounds = array<i64: 8, 128>}]} {
    %c0_i32 = arith.constant 0 : i32
    %0 = arith.cmpi eq, %arg1, %c0_i32 : i32
    %1 = arith.extui %0 : i1 to i32
    %c0_i32_0 = arith.constant 0 : i32
    %2 = arith.cmpi ne, %1, %c0_i32_0 : i32
    scf.if %2 {
      %cst = arith.constant 0.000000e+00 : f32
      %13 = vector.broadcast %cst : f32 to vector<8x128xf32>
      %c0 = arith.constant 0 : index
      %c0_5 = arith.constant 0 : index
      %14 = vector.load %arg4[%c0, %c0_5] : memref<8x128xf32, #tpu.memory_space<vmem>>, vector<8x128xf32>
      tpu.vector_store %arg4[%c0, %c0_5], %13 {strides = array<i32>} : memref<8x128xf32, #tpu.memory_space<vmem>>, vector<8x128xf32>,
    } else {
    }
    %c1_i32 = arith.constant 1 : i32
    %3 = arith.muli %arg0, %c1_i32 : i32
    %4 = arith.addi %3, %arg1 : i32
    %c512_i32 = arith.constant 512 : i32
    %5 = arith.muli %4, %c512_i32 : i32
    %c512_i32_1 = arith.constant 512 : i32
    %6 = arith.addi %5, %c512_i32_1 : i32
    %c512_i32_2 = arith.constant 512 : i32
    %7 = arith.cmpi sle, %6, %c512_i32_2 : i32
    %8 = arith.extui %7 : i1 to i32
    %c0_i32_3 = arith.constant 0 : i32
    %9 = arith.cmpi ne, %8, %c0_i32_3 : i32
    scf.if %9 {
      %c0 = arith.constant 0 : index
      %c0_5 = arith.constant 0 : index
      %13 = vector.load %arg4[%c0, %c0_5] : memref<8x128xf32, #tpu.memory_space<vmem>>, vector<8x128xf32>
      %cst = arith.constant 0.000000e+00 : f32
      %14 = vector.broadcast %cst : f32 to vector<8x128xf32>
      %c0_i32_6 = arith.constant 0 : i32
      %c2_i32 = arith.constant 2 : i32
      %15 = arith.addi %c0_i32_6, %c2_i32 : i32
      %c1_i32_7 = arith.constant 1 : i32
      %16 = scf.for %arg5 = %c0_i32_6 to %15 step %c1_i32_7 iter_args(%arg6 = %14) -> (vector<8x128xf32>)  : i32 {
        %c256_i32 = arith.constant 256 : i32
        %19 = arith.muli %arg5, %c256_i32 : i32
        %20 = tpu.assume_multiple %19, 256 : i32
        %21 = arith.index_cast %20 : i32 to index
        %c0_11 = arith.constant 0 : index
        %22 = vector.load %arg2[%21, %c0_11] : memref<512x128xf32, #tpu.memory_space<vmem>>, vector<256x128xf32>
        %23 = arith.index_cast %20 : i32 to index
        %c0_12 = arith.constant 0 : index
        %24 = vector.load %arg3[%23, %c0_12] : memref<512x128xf32, #tpu.memory_space<vmem>>, vector<256x128xf32>
        %cst_13 = arith.constant 2.000000e+00 : f32
        %25 = vector.broadcast %cst_13 : f32 to vector<256x128xf32>
        %26 = arith.subf %25, %22 : vector<256x128xf32>
        %cst_14 = arith.constant 0.000000e+00 : f32
        %27 = vector.broadcast %cst_14 : f32 to vector<256x128xf32>
        %28 = arith.maximumf %26, %27 : vector<256x128xf32>
        %cst_15 = arith.constant 1.000000e+00 : f32
        %29 = vector.broadcast %cst_15 : f32 to vector<256x128xf32>
        %30 = arith.subf %29, %24 : vector<256x128xf32>
        %31 = arith.mulf %22, %22 : vector<256x128xf32>
        %32 = arith.mulf %30, %31 : vector<256x128xf32>
        %33 = arith.mulf %28, %28 : vector<256x128xf32>
        %34 = arith.mulf %24, %33 : vector<256x128xf32>
        %35 = arith.addf %32, %34 : vector<256x128xf32>
        %36 = vector.shape_cast %35 : vector<256x128xf32> to vector<32x8x128xf32>
        %cst_16 = arith.constant dense<0.000000e+00> : vector<8x128xf32>
        %37 = vector.multi_reduction <add>, %36, %cst_16 [0] : vector<32x8x128xf32> to vector<8x128xf32>
        %38 = arith.addf %arg6, %37 : vector<8x128xf32>
        scf.yield %38 : vector<8x128xf32>
      }
      %c2_i32_8 = arith.constant 2 : i32
      %17 = arith.addf %13, %16 : vector<8x128xf32>
      %c0_9 = arith.constant 0 : index
      %c0_10 = arith.constant 0 : index
      %18 = vector.load %arg4[%c0_9, %c0_10] : memref<8x128xf32, #tpu.memory_space<vmem>>, vector<8x128xf32>
      tpu.vector_store %arg4[%c0_9, %c0_10], %17 {strides = array<i32>} : memref<8x128xf32, #tpu.memory_space<vmem>>, vector<8x128xf32>,
    } else {
    }
    %true = arith.constant true
    %10 = arith.xori %7, %true : i1
    %11 = arith.extui %10 : i1 to i32
    %c0_i32_4 = arith.constant 0 : i32
    %12 = arith.cmpi ne, %11, %c0_i32_4 : i32
    scf.if %12 {
      %c0 = arith.constant 0 : index
      %c0_5 = arith.constant 0 : index
      %13 = vector.load %arg4[%c0, %c0_5] : memref<8x128xf32, #tpu.memory_space<vmem>>, vector<8x128xf32>
      %cst = arith.constant 0.000000e+00 : f32
      %14 = vector.broadcast %cst : f32 to vector<8x128xf32>
      %c0_i32_6 = arith.constant 0 : i32
      %c2_i32 = arith.constant 2 : i32
      %15 = arith.addi %c0_i32_6, %c2_i32 : i32
      %c1_i32_7 = arith.constant 1 : i32
      %16 = scf.for %arg5 = %c0_i32_6 to %15 step %c1_i32_7 iter_args(%arg6 = %14) -> (vector<8x128xf32>)  : i32 {
        %c256_i32 = arith.constant 256 : i32
        %19 = arith.muli %arg5, %c256_i32 : i32
        %20 = tpu.assume_multiple %19, 256 : i32
        %21 = arith.index_cast %20 : i32 to index
        %c0_11 = arith.constant 0 : index
        %22 = vector.load %arg2[%21, %c0_11] : memref<512x128xf32, #tpu.memory_space<vmem>>, vector<256x128xf32>
        %23 = arith.index_cast %20 : i32 to index
        %c0_12 = arith.constant 0 : index
        %24 = vector.load %arg3[%23, %c0_12] : memref<512x128xf32, #tpu.memory_space<vmem>>, vector<256x128xf32>
        %cst_13 = arith.constant 2.000000e+00 : f32
        %25 = vector.broadcast %cst_13 : f32 to vector<256x128xf32>
        %26 = arith.subf %25, %22 : vector<256x128xf32>
        %cst_14 = arith.constant 0.000000e+00 : f32
        %27 = vector.broadcast %cst_14 : f32 to vector<256x128xf32>
        %28 = arith.maximumf %26, %27 : vector<256x128xf32>
        %cst_15 = arith.constant 1.000000e+00 : f32
        %29 = vector.broadcast %cst_15 : f32 to vector<256x128xf32>
        %30 = arith.subf %29, %24 : vector<256x128xf32>
        %31 = arith.mulf %22, %22 : vector<256x128xf32>
        %32 = arith.mulf %30, %31 : vector<256x128xf32>
        %33 = arith.mulf %28, %28 : vector<256x128xf32>
        %34 = arith.mulf %24, %33 : vector<256x128xf32>
        %35 = arith.addf %32, %34 : vector<256x128xf32>
        %36 = arith.addi %5, %20 : i32
        %37 = tpu.iota {dimensions = array<i32: 0>} : vector<256x128xi32>
        %38 = vector.broadcast %36 : i32 to vector<256x128xi32>
        %39 = arith.addi %38, %37 : vector<256x128xi32>
        %c512_i32_16 = arith.constant 512 : i32
        %40 = vector.broadcast %c512_i32_16 : i32 to vector<256x128xi32>
        %41 = arith.cmpi slt, %39, %40 : vector<256x128xi32>
        %cst_17 = arith.constant 0.000000e+00 : f32
        %42 = vector.broadcast %cst_17 : f32 to vector<256x128xf32>
        %43 = arith.select %41, %35, %42 : vector<256x128xi1>, vector<256x128xf32>
        %44 = vector.shape_cast %43 : vector<256x128xf32> to vector<32x8x128xf32>
        %cst_18 = arith.constant dense<0.000000e+00> : vector<8x128xf32>
        %45 = vector.multi_reduction <add>, %44, %cst_18 [0] : vector<32x8x128xf32> to vector<8x128xf32>
        %46 = arith.addf %arg6, %45 : vector<8x128xf32>
        scf.yield %46 : vector<8x128xf32>
      }
      %c2_i32_8 = arith.constant 2 : i32
      %17 = arith.addf %13, %16 : vector<8x128xf32>
      %c0_9 = arith.constant 0 : index
      %c0_10 = arith.constant 0 : index
      %18 = vector.load %arg4[%c0_9, %c0_10] : memref<8x128xf32, #tpu.memory_space<vmem>>, vector<8x128xf32>
      tpu.vector_store %arg4[%c0_9, %c0_10], %17 {strides = array<i32>} : memref<8x128xf32, #tpu.memory_space<vmem>>, vector<8x128xf32>,
    } else {
    }
    return
  }
  func.func @transform_0(%arg0: i32, %arg1: i32) -> (i32, i32) {
    %c1_i32 = arith.constant 1 : i32
    %0 = arith.muli %arg0, %c1_i32 : i32
    %1 = arith.addi %0, %arg1 : i32
    %c0_i32 = arith.constant 0 : i32
    %2 = arith.minsi %1, %c0_i32 : i32
    %c0_i32_0 = arith.constant 0 : i32
    %c0_i32_1 = arith.constant 0 : i32
    return %2, %c0_i32_0 : i32, i32
  }
  func.func @transform_1(%arg0: i32, %arg1: i32) -> (i32, i32) {
    %c1_i32 = arith.constant 1 : i32
    %0 = arith.muli %arg0, %c1_i32 : i32
    %1 = arith.addi %0, %arg1 : i32
    %c0_i32 = arith.constant 0 : i32
    %2 = arith.minsi %1, %c0_i32 : i32
    %c0_i32_0 = arith.constant 0 : i32
    %c0_i32_1 = arith.constant 0 : i32
    return %2, %c0_i32_0 : i32, i32
  }
  func.func @transform_2(%arg0: i32, %arg1: i32) -> (i32, i32) {
    %c0_i32 = arith.constant 0 : i32
    %c0_i32_0 = arith.constant 0 : i32
    return %arg0, %c0_i32 : i32, i32
  }
}

</mosaic_0001>

<bundles_post_ra>
// kernel: tpu_custom_call.1
= control target key start
LH: loop header
LB: loop body
LE: loop exit
PB: predicated region body
PF: predicated region fallthrough
CT: control target
= control target key end

     0   :  { %7 = vsyncpa [#allocation3], 0  ;;  %s1440_s0 = inlined_call_operand.hbm [shape: f32[512,128], index: 0, kind: input, shape index: {}]   ;;  %s1441_s1 = inlined_call_operand.hbm [shape: f32[512,128], index: 1, kind: input, shape index: {}]   ;;  %s1442_s2 = inlined_call_operand.hbm [shape: f32[8,128], index: 2, kind: output, shape index: {}]  }
   0x1   :  { %8 = vsyncpa [#allocation6], 0 }
   0x2   :  { %9 = vsyncpa [#allocation4], 0  ;;  %s1093_s9 = smov [#allocation2]   ;;  %s1005_s13 = scalar_lea.hbm %s1440_s0, 8192 }
   0x3   :  { %s21_s10 = sshll.u32 %s1093_s9, 4  ;;  %p1006_p0 = scmp.ne.s32.totalorder %s1440_s0, %s1005_s13  ;;  %s22_s10 = int_to_ptr.vmem [resolvable:$true] %s21_s10 }
   0x4   :  { %p1009_p1 = scmp.lt.u32.totalorder %s1005_s13, %s1440_s0 }
   0x6   :  { %p1011_p2 = pnand %p1009_p1, %p1006_p0 }
   0x8   :  { %1014 = shalt.err (!%p1011_p2)
}
   0x9   :  { %s1015_s18 = scalar_lea.vmem %s22_s10, 8192  ;;  %p1020_p4 = scmp.lt.s32.totalorder %s22_s10, %s22_s10 }
   0xa   :  { %p1016_p3 = scmp.ne.s32.totalorder %s22_s10, %s1015_s18  ;;  %p1021_p5 = scmp.lt.s32.totalorder %s1015_s18, %s1015_s18 }
   0xc   :  { %p1022_p6 = por %p1021_p5, %p1020_p4 }
   0xe   :  { %p1023_p7 = pnand %p1022_p6, %p1016_p3 }
  0x10   :  { %1026 = shalt.err (!%p1023_p7)
}
  0x11   :  { %s1094_s19 = smov 128   ;;  %s1095_s20 = smov 8  }
  0x12   :  { %27 = dma.hbm_to_vmem [thread:$0]  %s1440_s0, 8192, %s22_s10, [#allocation3], %s1094_s19, %s1094_s19, %s1095_s20  }
  0x13   :  { %s1096_s23 = smov [#allocation5]   ;;  %s1027_s27 = scalar_lea.hbm %s1441_s1, 8192 }
  0x14   :  { %s39_s24 = sshll.u32 %s1096_s23, 4  ;;  %p1028_p8 = scmp.ne.s32.totalorder %s1441_s1, %s1027_s27  ;;  %s40_s24 = int_to_ptr.vmem [resolvable:$true] %s39_s24 }
  0x15   :  { %p1031_p9 = scmp.lt.u32.totalorder %s1027_s27, %s1441_s1 }
  0x17   :  { %p1033_p10 = pnand %p1031_p9, %p1028_p8 }
  0x19   :  { %1036 = shalt.err (!%p1033_p10)
}
  0x1a   :  { %s1037_s4 = scalar_lea.vmem %s40_s24, 8192  ;;  %p1042_p12 = scmp.lt.s32.totalorder %s40_s24, %s40_s24 }
  0x1b   :  { %p1038_p11 = scmp.ne.s32.totalorder %s40_s24, %s1037_s4  ;;  %p1043_p13 = scmp.lt.s32.totalorder %s1037_s4, %s1037_s4 }
  0x1d   :  { %p1044_p0 = por %p1043_p13, %p1042_p12 }
  0x1f   :  { %p1045_p1 = pnand %p1044_p0, %p1038_p11 }
  0x21   :  { %1048 = shalt.err (!%p1045_p1)
}
  0x22   :  { %45 = dma.hbm_to_vmem [thread:$0]  %s1441_s1, 8192, %s40_s24, [#allocation6], %s1094_s19, %s1094_s19, %s1095_s20  }
  0x23   :  { %1079 = dma.done.wait [#allocation3], 8192  }
  0x24   :  { %1080 = vsyncadd [#allocation3], 4294959104 }
  0x25   :  { %1081 = dma.done.wait [#allocation6], 8192  }
  0x26   :  { %1082 = vsyncadd [#allocation6], 4294959104  ;;  %v1097_v0 = vmov 0.0   ;;  %v1138_v1 = vmov 0.0   ;;  %s1140_s6 = smov 0  }
  0x27   :  { %64 = vst [vmem:[#allocation7] sm:$0xff] %v1097_v0 }
  0x28 LB: > { %s981_s1 = sshll.u32 %s1091_s6, 8  ;;  %s78_s6 = sadd.s32 1, %s1091_s6   ;;  %s1091_s6 = sphi %s1140_s6, %s78_s6   ;;  %v1087_v1 = vphi %v1138_v1, %v1460_v1  }
  0x29   : > { %s1151_s7 = scalar_lea.vmem [#allocation2], %s981_s1  ;;  %s1218_s8 = scalar_lea.vmem [#allocation5], %s981_s1 }
  0x2a   : > { %v82_v2 = vld [vmem:[%s1151_s7] sm:$0xff]  ;;  %v83_v3 = vld [vmem:[%s1151_s7 + $0x8] sm:$0xff]  ;;  %v84_v4 = vld [vmem:[%s1151_s7 + $0x10] sm:$0xff]  ;;  %p75_p2 = scmp.ge.s32.totalorder %s78_s6, 2  }
  0x2b   : > { %v85_v5 = vld [vmem:[%s1151_s7 + $0x18] sm:$0xff]  ;;  %v1158_v6 = vld [vmem:[%s1151_s7 + $0x20] sm:$0xff]  ;;  %v1161_v7 = vld [vmem:[%s1151_s7 + $0x28] sm:$0xff]  ;;  %v147_v14 = vsub.f32 2.0, %v82_v2  ;;  %v148_v15 = vsub.f32 2.0, %v83_v3  ;;  %v149_v16 = vsub.f32 2.0, %v84_v4  ;;  %v243_v21 = vmul.f32 %v82_v2, %v82_v2 }
  0x2c   : > { %v1164_v8 = vld [vmem:[%s1151_s7 + $0x30] sm:$0xff]  ;;  %v1167_v9 = vld [vmem:[%s1151_s7 + $0x38] sm:$0xff]  ;;  %v1170_v10 = vld [vmem:[%s1151_s7 + $0x40] sm:$0xff]  ;;  %v150_v18 = vsub.f32 2.0, %v85_v5  ;;  %v151_v19 = vsub.f32 2.0, %v1158_v6  ;;  %v152_v20 = vsub.f32 2.0, %v1161_v7  ;;  %v244_v28 = vmul.f32 %v83_v3, %v83_v3 }
  0x2d   : > { %v1173_v11 = vld [vmem:[%s1151_s7 + $0x48] sm:$0xff]  ;;  %v1176_v12 = vld [vmem:[%s1151_s7 + $0x50] sm:$0xff]  ;;  %v1179_v13 = vld [vmem:[%s1151_s7 + $0x58] sm:$0xff]  ;;  %v153_v25 = vsub.f32 2.0, %v1164_v8  ;;  %v154_v26 = vsub.f32 2.0, %v1167_v9  ;;  %v155_v27 = vsub.f32 2.0, %v1170_v10  ;;  %v245_v35 = vmul.f32 %v84_v4, %v84_v4 }
  0x2e   : > { %v1182_v17 = vld [vmem:[%s1151_s7 + $0x60] sm:$0xff]  ;;  %v1187_v22 = vld [vmem:[%s1151_s7 + $0x68] sm:$0xff]  ;;  %v1190_v23 = vld [vmem:[%s1151_s7 + $0x70] sm:$0xff]  ;;  %v156_v32 = vsub.f32 2.0, %v1173_v11  ;;  %v157_v33 = vsub.f32 2.0, %v1176_v12  ;;  %v179_v40 = vmax.f32 %v147_v14, 0.0  ;;  %v246_v42 = vmul.f32 %v85_v5, %v85_v5 }
  0x2f   : > { %v1193_v24 = vld [vmem:[%s1151_s7 + $0x78] sm:$0xff]  ;;  %v1199_v29 = vld [vmem:[%s1151_s7 + $0x80] sm:$0xff]  ;;  %v1202_v30 = vld [vmem:[%s1151_s7 + $0x88] sm:$0xff]  ;;  %v180_v41 = vmax.f32 %v148_v15, 0.0  ;;  %v1228_v47 = vmul.f32 %v1158_v6, %v1158_v6  ;;  %v181_v53 = vmax.f32 %v149_v16, 0.0  ;;  %v1243_v54 = vmul.f32 %v1161_v7, %v1161_v7  ;;  %s1098_s9 = smov (%p75_p2), [#allocation7]  }
  0x30   : > { %v1205_v31 = vld [vmem:[%s1151_s7 + $0x90] sm:$0xff]  ;;  %v1211_v36 = vld [vmem:[%s1151_s7 + $0x98] sm:$0xff]  ;;  %v1214_v37 = vld [vmem:[%s1151_s7 + $0xa0] sm:$0xff]  ;;  %v182_v62 = vmax.f32 %v150_v18, 0.0  ;;  %v307_v0 = vmul.f32 %v179_v40, %v179_v40  ;;  %v249_v6 = vmul.f32 %v1164_v8, %v1164_v8  ;;  %v183_v15 = vmax.f32 %v151_v19, 0.0  ;;  %s943_s10 = sshll.u32 (%p75_p2), %s1098_s9, 4  ;;  %s944_s10 = int_to_ptr.vmem [resolvable:$true] %s943_s10 }
  0x31   : > { %v115_v38 = vld [vmem:[%s1218_s8] sm:$0xff]  ;;  %v116_v43 = vld [vmem:[%s1218_s8 + $0x8] sm:$0xff]  ;;  %v1234_v49 = vld [vmem:[%s1151_s7 + $0xb0] sm:$0xff]  ;;  %v308_v2 = vmul.f32 %v180_v41, %v180_v41  ;;  %v1266_v18 = vmul.f32 %v1167_v9, %v1167_v9  ;;  %v309_v40 = vmul.f32 %v181_v53, %v181_v53  ;;  %v184_v5 = vmax.f32 %v152_v20, 0.0  ;;  %s1049_s11 = scalar_lea.vmem (%p75_p2), %s944_s10, 128  ;;  %p1054_p4 = scmp.lt.s32.totalorder (%p75_p2), %s944_s10, %s944_s10 }
  0x32   : > { %v1231_v48 = vld [vmem:[%s1151_s7 + $0xa8] sm:$0xff]  ;;  %v1237_v50 = vld [vmem:[%s1151_s7 + $0xb8] sm:$0xff]  ;;  %v117_v55 = vld [vmem:[%s1218_s8 + $0x10] sm:$0xff]  ;;  %v211_v59 = vsub.f32 1.0, %v115_v38  ;;  %v212_v63 = vsub.f32 1.0, %v116_v43  ;;  %v310_v19 = vmul.f32 %v182_v62, %v182_v62  ;;  %v339_v51 = vmul.f32 %v307_v0, %v115_v38  ;;  %p1050_p3 = scmp.ne.s32.totalorder (%p75_p2), %s944_s10, %s1049_s11  ;;  %p1055_p5 = scmp.lt.s32.totalorder (%p75_p2), %s1049_s11, %s1049_s11 }
  0x33   : > { %v1250_v60 = vld [vmem:[%s1151_s7 + $0xc0] sm:$0xff]  ;;  %v118_v61 = vld [vmem:[%s1218_s8 + $0x18] sm:$0xff]  ;;  %v1259_v7 = vld [vmem:[%s1151_s7 + $0xc8] sm:$0xff]  ;;  %v213_v16 = vsub.f32 1.0, %v117_v55  ;;  %v340_v46 = vmul.f32 %v308_v2, %v116_v43  ;;  %v185_v44 = vmax.f32 %v153_v25, 0.0  ;;  %v251_v20 = vmul.f32 %v1170_v10, %v1170_v10 }
  0x34   : > { %v1262_v14 = vld [vmem:[%s1151_s7 + $0xd0] sm:$0xff]  ;;  %v119_v41 = vld [vmem:[%s1218_s8 + $0x20] sm:$0xff]  ;;  %v214_v3 = vsub.f32 1.0, %v118_v61  ;;  %v275_v58 = vmul.f32 %v243_v21, %v211_v59  ;;  %v1271_v57 = vld [vmem:[%s1151_s7 + $0xd8] sm:$0xff]  ;;  %v276_v52 = vmul.f32 %v244_v28, %v212_v63  ;;  %v311_v38 = vmul.f32 %v183_v15, %v183_v15  ;;  %p1056_p6 = por (%p75_p2), %p1055_p5, %p1054_p4 }
  0x35   : > { %v120_v56 = vld [vmem:[%s1218_s8 + $0x28] sm:$0xff]  ;;  %v1281_v4 = vld [vmem:[%s1151_s7 + $0xe0] sm:$0xff]  ;;  %v121_v59 = vld [vmem:[%s1218_s8 + $0x30] sm:$0xff]  ;;  %v215_v28 = vsub.f32 1.0, %v119_v41  ;;  %v277_v62 = vmul.f32 %v245_v35, %v213_v16  ;;  %v341_v43 = vmul.f32 %v309_v40, %v117_v55  ;;  %v174_v63 = vsub.f32 2.0, %v1271_v57 }
  0x36   : > { %v1284_v21 = vld [vmem:[%s1151_s7 + $0xe8] sm:$0xff]  ;;  %v186_v8 = vmax.f32 %v154_v26, 0.0  ;;  %v216_v25 = vsub.f32 1.0, %v120_v56  ;;  %v278_v0 = vmul.f32 %v246_v42, %v214_v3  ;;  %v122_v2 = vld [vmem:[%s1218_s8 + $0x38] sm:$0xff]  ;;  %v312_v53 = vmul.f32 %v184_v5, %v184_v5  ;;  %v1296_v40 = vld [vmem:[%s1151_s7 + $0xf0] sm:$0xff]  ;;  %p1057_p7 = pnand (%p75_p2), %p1056_p6, %p1050_p3 }
  0x37   : > { %v342_v45 = vmul.f32 %v310_v19, %v118_v61  ;;  %v371_v39 = vadd.f32 %v339_v51, %v275_v58  ;;  %v372_v34 = vadd.f32 %v340_v46, %v276_v52  ;;  %v175_v35 = vsub.f32 2.0, %v1281_v4  ;;  %v123_v9 = vld [vmem:[%s1218_s8 + $0x40] sm:$0xff]  ;;  %v124_v61 = vld [vmem:[%s1218_s8 + $0x48] sm:$0xff] }
  0x38   : > { %v187_v55 = vmax.f32 %v155_v27, 0.0  ;;  %v217_v16 = vsub.f32 1.0, %v121_v59  ;;  %v279_v26 = vmul.f32 %v1228_v47, %v215_v28  ;;  %v313_v42 = vmul.f32 %v185_v44, %v185_v44  ;;  %v1306_v27 = vld [vmem:[%s1151_s7 + $0xf8] sm:$0xff] }
  0x39   : > { %v343_v3 = vmul.f32 %v311_v38, %v119_v41  ;;  %v373_v51 = vadd.f32 %v341_v43, %v277_v62  ;;  %v188_v46 = vmax.f32 %v156_v32, 0.0  ;;  %v218_v52 = vsub.f32 1.0, %v122_v2  ;;  %v125_v38 = vld [vmem:[%s1218_s8 + $0x50] sm:$0xff] }
  0x3a   : > { %v252_v58 = vmul.f32 %v1173_v11, %v1173_v11  ;;  %v280_v10 = vmul.f32 %v1243_v54, %v216_v25  ;;  %v314_v5 = vmul.f32 %v186_v8, %v186_v8  ;;  %v344_v19 = vmul.f32 %v312_v53, %v120_v56 }
  0x3b   : > { %v374_v47 = vadd.f32 %v342_v45, %v278_v0  ;;  %v403_v44 = vadd.f32 %v372_v34, %v371_v39  ;;  %v177_v41 = vsub.f32 2.0, %v1296_v40  ;;  %v189_v28 = vmax.f32 %v157_v33, 0.0  ;;  %v126_v39 = vld [vmem:[%s1218_s8 + $0x58] sm:$0xff] }
  0x3c   : > { %v219_v32 = vsub.f32 1.0, %v123_v9  ;;  %v281_v62 = vmul.f32 %v249_v6, %v217_v16  ;;  %v315_v43 = vmul.f32 %v187_v55, %v187_v55  ;;  %v345_v11 = vmul.f32 %v313_v42, %v121_v59 }
  0x3d   : > { %v375_v54 = vadd.f32 %v343_v3, %v279_v26  ;;  %v404_v25 = vadd.f32 %v403_v44, %v373_v51  ;;  %v178_v15 = vsub.f32 2.0, %v1306_v27  ;;  %v1443_v56 = vsub.f32 2.0, %v1179_v13  ;;  %v127_v3 = vld [vmem:[%s1218_s8 + $0x60] sm:$0xff] }
  0x3e   : > { %v220_v45 = vsub.f32 1.0, %v124_v61  ;;  %v282_v34 = vmul.f32 %v1266_v18, %v218_v52  ;;  %v316_v8 = vmul.f32 %v188_v46, %v188_v46  ;;  %v346_v0 = vmul.f32 %v314_v5, %v122_v2 }
  0x3f   : > { %v190_v53 = vmax.f32 %v1443_v56, 0.0  ;;  %v376_v33 = vadd.f32 %v344_v19, %v280_v10  ;;  %v405_v6 = vadd.f32 %v404_v25, %v374_v47  ;;  %v1444_v55 = vsub.f32 2.0, %v1182_v17  ;;  %v128_v19 = vld [vmem:[%s1218_s8 + $0x68] sm:$0xff] }
  0x40   : > { %v221_v16 = vsub.f32 1.0, %v125_v38  ;;  %v253_v26 = vmul.f32 %v1176_v12, %v1176_v12  ;;  %v283_v42 = vmul.f32 %v251_v20, %v219_v32  ;;  %v317_v51 = vmul.f32 %v189_v28, %v189_v28 }
  0x41   : > { %v191_v59 = vmax.f32 %v1444_v55, 0.0  ;;  %v347_v44 = vmul.f32 %v315_v43, %v123_v9  ;;  %v377_v56 = vadd.f32 %v345_v11, %v281_v62  ;;  %v406_v18 = vadd.f32 %v405_v6, %v375_v54  ;;  %v129_v11 = vld [vmem:[%s1218_s8 + $0x70] sm:$0xff] }
  0x42   : > { %v1445_v46 = vsub.f32 2.0, %v1187_v22  ;;  %v222_v52 = vsub.f32 1.0, %v126_v39  ;;  %v254_v10 = vmul.f32 %v1179_v13, %v1179_v13  ;;  %v284_v5 = vmul.f32 %v252_v58, %v220_v45 }
  0x43   : > { %v318_v47 = vmul.f32 %v190_v53, %v190_v53  ;;  %v348_v25 = vmul.f32 %v316_v8, %v124_v61  ;;  %v378_v12 = vadd.f32 %v346_v0, %v282_v34  ;;  %v407_v20 = vadd.f32 %v406_v18, %v376_v33  ;;  %v130_v0 = vld [vmem:[%s1218_s8 + $0x78] sm:$0xff] }
  0x44   : > { %v192_v2 = vmax.f32 %v1445_v46, 0.0  ;;  %v1446_v28 = vsub.f32 2.0, %v1190_v23  ;;  %v223_v32 = vsub.f32 1.0, %v127_v3  ;;  %v255_v62 = vmul.f32 %v1182_v17, %v1182_v17 }
  0x45   : > { %v285_v43 = vmul.f32 %v253_v26, %v221_v16  ;;  %v319_v54 = vmul.f32 %v191_v59, %v191_v59  ;;  %v349_v6 = vmul.f32 %v317_v51, %v125_v38  ;;  %v379_v13 = vadd.f32 %v347_v44, %v283_v42  ;;  %v131_v44 = vld [vmem:[%s1218_s8 + $0x80] sm:$0xff] }
  0x46   : > { %v193_v9 = vmax.f32 %v1446_v28, 0.0  ;;  %v408_v58 = vadd.f32 %v407_v20, %v377_v56  ;;  %v1447_v53 = vsub.f32 2.0, %v1193_v24  ;;  %v224_v45 = vsub.f32 1.0, %v128_v19 }
  0x47   : > { %v256_v34 = vmul.f32 %v1187_v22, %v1187_v22  ;;  %v286_v8 = vmul.f32 %v254_v10, %v222_v52  ;;  %v320_v33 = vmul.f32 %v192_v2, %v192_v2  ;;  %v350_v55 = vmul.f32 %v318_v47, %v126_v39  ;;  %v132_v47 = vld [vmem:[%s1218_s8 + $0x88] sm:$0xff] }
  0x48   : > { %v194_v61 = vmax.f32 %v1447_v53, 0.0  ;;  %v380_v17 = vadd.f32 %v348_v25, %v284_v5  ;;  %v409_v16 = vadd.f32 %v408_v58, %v378_v12  ;;  %v1448_v59 = vsub.f32 2.0, %v1199_v29 }
  0x49   : > { %v225_v26 = vsub.f32 1.0, %v129_v11  ;;  %v257_v42 = vmul.f32 %v1190_v23, %v1190_v23  ;;  %v287_v51 = vmul.f32 %v255_v62, %v223_v32  ;;  %v321_v56 = vmul.f32 %v193_v9, %v193_v9 }
  0x4a   : > { %v195_v38 = vmax.f32 %v1448_v59, 0.0  ;;  %v351_v18 = vmul.f32 %v319_v54, %v127_v3  ;;  %v381_v22 = vadd.f32 %v349_v6, %v285_v43  ;;  %v410_v46 = vadd.f32 %v409_v16, %v379_v13  ;;  %v133_v43 = vld [vmem:[%s1218_s8 + $0x90] sm:$0xff] }
  0x4b   : > { %v1449_v2 = vsub.f32 2.0, %v1202_v30  ;;  %v226_v52 = vsub.f32 1.0, %v130_v0  ;;  %v258_v10 = vmul.f32 %v1193_v24, %v1193_v24  ;;  %v288_v5 = vmul.f32 %v256_v34, %v224_v45  ;;  %v134_v34 = vld [vmem:[%s1218_s8 + $0x98] sm:$0xff] }
  0x4c   : > { %v322_v25 = vmul.f32 %v194_v61, %v194_v61  ;;  %v352_v12 = vmul.f32 %v320_v33, %v128_v19  ;;  %v382_v23 = vadd.f32 %v350_v55, %v286_v8  ;;  %v411_v20 = vadd.f32 %v410_v46, %v380_v17 }
  0x4d   : > { %v196_v39 = vmax.f32 %v1449_v2, 0.0  ;;  %v1450_v28 = vsub.f32 2.0, %v1205_v31  ;;  %v227_v9 = vsub.f32 1.0, %v131_v44  ;;  %v259_v32 = vmul.f32 %v1199_v29, %v1199_v29 }
  0x4e   : > { %v289_v62 = vmul.f32 %v257_v42, %v225_v26  ;;  %v323_v54 = vmul.f32 %v195_v38, %v195_v38  ;;  %v353_v6 = vmul.f32 %v321_v56, %v129_v11  ;;  %v383_v24 = vadd.f32 %v351_v18, %v287_v51  ;;  %v135_v26 = vld [vmem:[%s1218_s8 + $0xa0] sm:$0xff] }
  0x4f   : > { %v197_v3 = vmax.f32 %v1450_v28, 0.0  ;;  %v412_v13 = vadd.f32 %v411_v20, %v381_v22  ;;  %v1451_v58 = vsub.f32 2.0, %v1211_v36  ;;  %v228_v53 = vsub.f32 1.0, %v132_v47  ;;  %v137_v28 = vld [vmem:[%s1218_s8 + $0xb0] sm:$0xff] }
  0x50   : > { %v260_v61 = vmul.f32 %v1202_v30, %v1202_v30  ;;  %v290_v45 = vmul.f32 %v258_v10, %v226_v52  ;;  %v324_v8 = vmul.f32 %v196_v39, %v196_v39  ;;  %v354_v33 = vmul.f32 %v322_v25, %v130_v0  ;;  %v136_v39 = vld [vmem:[%s1218_s8 + $0xa8] sm:$0xff] }
  0x51   : > { %v198_v19 = vmax.f32 %v1451_v58, 0.0  ;;  %v384_v29 = vadd.f32 %v352_v12, %v288_v5  ;;  %v413_v55 = vadd.f32 %v412_v13, %v382_v23  ;;  %v1452_v17 = vsub.f32 2.0, %v1214_v37  ;;  %v138_v13 = vld [vmem:[%s1218_s8 + $0xb8] sm:$0xff] }
  0x52   : > { %v229_v16 = vsub.f32 1.0, %v133_v43  ;;  %v261_v59 = vmul.f32 %v1205_v31, %v1205_v31  ;;  %v291_v38 = vmul.f32 %v259_v32, %v227_v9  ;;  %v325_v42 = vmul.f32 %v197_v3, %v197_v3 }
  0x53   : > { %v199_v11 = vmax.f32 %v1452_v17, 0.0  ;;  %v355_v51 = vmul.f32 %v323_v54, %v131_v44  ;;  %v385_v30 = vadd.f32 %v353_v6, %v289_v62  ;;  %v414_v56 = vadd.f32 %v413_v55, %v383_v24 }
  0x54   : > { %v1453_v18 = vsub.f32 2.0, %v1231_v48  ;;  %v230_v22 = vsub.f32 1.0, %v134_v34  ;;  %v262_v46 = vmul.f32 %v1211_v36, %v1211_v36  ;;  %v292_v2 = vmul.f32 %v260_v61, %v228_v53 }
  0x55   : > { %v326_v52 = vmul.f32 %v198_v19, %v198_v19  ;;  %v356_v10 = vmul.f32 %v324_v8, %v132_v47  ;;  %v386_v31 = vadd.f32 %v354_v33, %v290_v45  ;;  %v415_v5 = vadd.f32 %v414_v56, %v384_v29  ;;  %v139_v29 = vld [vmem:[%s1218_s8 + $0xc0] sm:$0xff] }
  0x56   : > { %v200_v0 = vmax.f32 %v1453_v18, 0.0  ;;  %v1454_v25 = vsub.f32 2.0, %v1234_v49  ;;  %v231_v12 = vsub.f32 1.0, %v135_v26  ;;  %v263_v23 = vmul.f32 %v1214_v37, %v1214_v37 }
  0x57   : > { %v293_v20 = vmul.f32 %v261_v59, %v229_v16  ;;  %v327_v3 = vmul.f32 %v199_v11, %v199_v11  ;;  %v357_v9 = vmul.f32 %v325_v42, %v133_v43  ;;  %v387_v36 = vadd.f32 %v355_v51, %v291_v38  ;;  %v140_v51 = vld [vmem:[%s1218_s8 + $0xc8] sm:$0xff] }
  0x58   : > { %v201_v44 = vmax.f32 %v1454_v25, 0.0  ;;  %v416_v32 = vadd.f32 %v415_v5, %v385_v30  ;;  %v1455_v62 = vsub.f32 2.0, %v1237_v50  ;;  %v232_v54 = vsub.f32 1.0, %v136_v39 }
  0x59   : > { %v264_v6 = vmul.f32 %v1231_v48, %v1231_v48  ;;  %v294_v24 = vmul.f32 %v262_v46, %v230_v22  ;;  %v328_v58 = vmul.f32 %v200_v0, %v200_v0  ;;  %v358_v19 = vmul.f32 %v326_v52, %v134_v34  ;;  %v141_v52 = vld [vmem:[%s1218_s8 + $0xd0] sm:$0xff] }
  0x5a   : > { %v202_v47 = vmax.f32 %v1455_v62, 0.0  ;;  %v388_v37 = vadd.f32 %v356_v10, %v292_v2  ;;  %v417_v53 = vadd.f32 %v416_v32, %v386_v31  ;;  %v1456_v61 = vsub.f32 2.0, %v1250_v60 }
  0x5b   : > { %v233_v45 = vsub.f32 1.0, %v137_v28  ;;  %v265_v8 = vmul.f32 %v1234_v49, %v1234_v49  ;;  %v295_v33 = vmul.f32 %v263_v23, %v231_v12  ;;  %v329_v55 = vmul.f32 %v201_v44, %v201_v44  ;;  %v142_v23 = vld [vmem:[%s1218_s8 + $0xd8] sm:$0xff] }
  0x5c   : > { %v203_v43 = vmax.f32 %v1456_v61, 0.0  ;;  %v359_v17 = vmul.f32 %v327_v3, %v135_v26  ;;  %v389_v48 = vadd.f32 %v357_v9, %v293_v20  ;;  %v418_v11 = vadd.f32 %v417_v53, %v387_v36 }
  0x5d   : > { %v1457_v16 = vsub.f32 2.0, %v1259_v7  ;;  %v234_v59 = vsub.f32 1.0, %v138_v13  ;;  %v266_v38 = vmul.f32 %v1237_v50, %v1237_v50  ;;  %v296_v42 = vmul.f32 %v264_v6, %v232_v54 }
  0x5e   : > { %v330_v30 = vmul.f32 %v202_v47, %v202_v47  ;;  %v360_v56 = vmul.f32 %v328_v58, %v136_v39  ;;  %v390_v49 = vadd.f32 %v358_v19, %v294_v24  ;;  %v419_v18 = vadd.f32 %v418_v11, %v388_v37 }
  0x5f   : > { %v204_v34 = vmax.f32 %v1457_v16, 0.0  ;;  %v1458_v0 = vsub.f32 2.0, %v1262_v14  ;;  %v235_v22 = vsub.f32 1.0, %v139_v29  ;;  %v267_v46 = vmul.f32 %v1250_v60, %v1250_v60 }
  0x60   : > { %v297_v2 = vmul.f32 %v265_v8, %v233_v45  ;;  %v331_v10 = vmul.f32 %v203_v43, %v203_v43  ;;  %v361_v31 = vmul.f32 %v329_v55, %v137_v28  ;;  %v391_v50 = vadd.f32 %v359_v17, %v295_v33  ;;  %v145_v55 = vld [vmem:[%s1218_s8 + $0xf0] sm:$0xff] }
  0x61   : > { %v205_v26 = vmax.f32 %v1458_v0, 0.0  ;;  %v420_v5 = vadd.f32 %v419_v18, %v389_v48  ;;  %v206_v39 = vmax.f32 %v174_v63, 0.0  ;;  %v236_v25 = vsub.f32 1.0, %v140_v51  ;;  %v143_v63 = vld [vmem:[%s1218_s8 + $0xe0] sm:$0xff] }
  0x62   : > { %v268_v44 = vmul.f32 %v1259_v7, %v1259_v7  ;;  %v298_v12 = vmul.f32 %v266_v38, %v234_v59  ;;  %v332_v20 = vmul.f32 %v204_v34, %v204_v34  ;;  %v362_v3 = vmul.f32 %v330_v30, %v138_v13 }
  0x63   : > { %v392_v60 = vadd.f32 %v360_v56, %v296_v42  ;;  %v421_v9 = vadd.f32 %v420_v5, %v390_v49  ;;  %v207_v28 = vmax.f32 %v175_v35, 0.0  ;;  %v237_v36 = vsub.f32 1.0, %v141_v52  ;;  %v144_v35 = vld [vmem:[%s1218_s8 + $0xe8] sm:$0xff]  ;;  %v146_v42 = vld [vmem:[%s1218_s8 + $0xf8] sm:$0xff] }
  0x64   : > { %v269_v32 = vmul.f32 %v1262_v14, %v1262_v14  ;;  %v299_v62 = vmul.f32 %v267_v46, %v235_v22  ;;  %v333_v47 = vmul.f32 %v205_v26, %v205_v26  ;;  %v363_v54 = vmul.f32 %v331_v10, %v139_v29 }
  0x65   : > { %v393_v7 = vadd.f32 %v361_v31, %v297_v2  ;;  %v422_v6 = vadd.f32 %v421_v9, %v391_v50  ;;  %v1459_v24 = vsub.f32 2.0, %v1284_v21  ;;  %v238_v58 = vsub.f32 1.0, %v142_v23 }
  0x66   : > { %v270_v19 = vmul.f32 %v1271_v57, %v1271_v57  ;;  %v300_v37 = vmul.f32 %v268_v44, %v236_v25  ;;  %v334_v53 = vmul.f32 %v206_v39, %v206_v39  ;;  %v364_v61 = vmul.f32 %v332_v20, %v140_v51 }
  0x67   : > { %v208_v13 = vmax.f32 %v1459_v24, 0.0  ;;  %v394_v14 = vadd.f32 %v362_v3, %v298_v12  ;;  %v423_v43 = vadd.f32 %v422_v6, %v392_v60  ;;  %v209_v45 = vmax.f32 %v177_v41, 0.0 }
  0x68   : > { %v239_v8 = vsub.f32 1.0, %v143_v63  ;;  %v271_v33 = vmul.f32 %v1281_v4, %v1281_v4  ;;  %v301_v29 = vmul.f32 %v269_v32, %v237_v36  ;;  %v335_v17 = vmul.f32 %v207_v28, %v207_v28 }
  0x69   : > { %v365_v48 = vmul.f32 %v333_v47, %v141_v52  ;;  %v395_v11 = vadd.f32 %v363_v54, %v299_v62  ;;  %v424_v57 = vadd.f32 %v423_v43, %v393_v7  ;;  %v210_v16 = vmax.f32 %v178_v15, 0.0 }
  0x6a   : > { %v240_v34 = vsub.f32 1.0, %v144_v35  ;;  %v272_v59 = vmul.f32 %v1284_v21, %v1284_v21  ;;  %v302_v38 = vmul.f32 %v270_v19, %v238_v58  ;;  %v336_v41 = vmul.f32 %v208_v13, %v208_v13 }
  0x6b   : > { %v366_v51 = vmul.f32 %v334_v53, %v142_v23  ;;  %v396_v30 = vadd.f32 %v364_v61, %v300_v37  ;;  %v425_v56 = vadd.f32 %v424_v57, %v394_v14  ;;  %v241_v4 = vsub.f32 1.0, %v145_v55 }
  0x6c   : > { %v273_v49 = vmul.f32 %v1296_v40, %v1296_v40  ;;  %v303_v18 = vmul.f32 %v271_v33, %v239_v8  ;;  %v337_v0 = vmul.f32 %v209_v45, %v209_v45  ;;  %v367_v26 = vmul.f32 %v335_v17, %v143_v63 }
  0x6d   : > { %v397_v22 = vadd.f32 %v365_v48, %v301_v29  ;;  %v426_v46 = vadd.f32 %v425_v56, %v395_v11  ;;  %v242_v15 = vsub.f32 1.0, %v146_v42  ;;  %v274_v2 = vmul.f32 %v1306_v27, %v1306_v27 }
  0x6e   : > { %v304_v21 = vmul.f32 %v272_v59, %v240_v34  ;;  %v338_v52 = vmul.f32 %v210_v16, %v210_v16  ;;  %v368_v10 = vmul.f32 %v336_v41, %v144_v35  ;;  %v398_v31 = vadd.f32 %v366_v51, %v302_v38 }
  0x6f   : > { %v427_v50 = vadd.f32 %v426_v46, %v396_v30  ;;  %v305_v5 = vmul.f32 %v273_v49, %v241_v4  ;;  %v369_v39 = vmul.f32 %v337_v0, %v145_v55  ;;  %v399_v25 = vadd.f32 %v367_v26, %v303_v18 }
  0x70   : > { %v306_v12 = vmul.f32 %v274_v2, %v242_v15  ;;  %v370_v40 = vmul.f32 %v338_v52, %v146_v42  ;;  %v400_v23 = vadd.f32 %v368_v10, %v304_v21 }
  0x71   : > { %v428_v44 = vadd.f32 %v427_v50, %v397_v22  ;;  %v401_v3 = vadd.f32 %v369_v39, %v305_v5 }
  0x72   : > { %v402_v9 = vadd.f32 %v370_v40, %v306_v12 }
  0x73   : > { %v429_v20 = vadd.f32 %v428_v44, %v398_v31 }
  0x75   : > { %v430_v60 = vadd.f32 %v429_v20, %v399_v25 }
  0x77   : > { %v431_v28 = vadd.f32 %v430_v60, %v400_v23 }
  0x79   : > { %v432_v36 = vadd.f32 %v431_v28, %v401_v3  ;;  %77 = sbr.rel (!%p75_p2) target bundleno = 40 (0x28), region = 68 }
  0x7b   : > { %v433_v32 = vadd.f32 %v432_v36, %v402_v9 }
  0x7d   : > { %v434_v27 = vadd.f32 %v1087_v1, %v433_v32  }
  0x7f   : > { %v1460_v1 = vmov %v434_v27  ;;  %436 = vst [vmem:[#allocation7] sm:$0xff] (%p75_p2), %v434_v27 }
  0x80   :  { %1060 = shalt.err (!%p1057_p7)
}
  0x81   :  { %s1061_s14 = scalar_lea.hbm %s1442_s2, 128 }
  0x82   :  { %p1062_p8 = scmp.ne.s32.totalorder %s1442_s2, %s1061_s14  ;;  %p1065_p9 = scmp.lt.u32.totalorder %s1061_s14, %s1442_s2 }
  0x84   :  { %p1067_p10 = pnand %p1065_p9, %p1062_p8 }
  0x86   :  { %1070 = shalt.err (!%p1067_p10)
}
  0x87   :  { %946 = dma.vmem_to_hbm [thread:$0]  %s944_s10, 128, %s1442_s2, [#allocation4]  }
  0x88   :  { %1083 = dma.done.wait [#allocation4], 128  }
  0x89   :  { %1084 = vsyncadd [#allocation4], 4294967168 }
  0x8a   :  { %950 = vsyncpa [#allocation3], 1 }
  0x8b   :  { %951 = vsyncpa [#allocation6], 1 }
  0x8c   :  { %952 = vsyncpa [#allocation4], 1 }

</bundles_post_ra>
